<compile_context>
chip_gen: v5e
topology: v5e:2x2
jax: 0.10.0
libtpu: 0.0.40
codegen_flags: <defaults>
</compile_context>

<pallas_src>
from functools import partial

import numpy as np
import jax
import jax.numpy as jnp
from jax import lax
from jax.experimental import pallas as pl
from jax.experimental.pallas import tpu as pltpu


# ------------------------------ small helpers ------------------------------

def _round_up(v, m):
    return ((v + m - 1) // m) * m


def _pick_tile(dim, pref, mult):
    """Pick a tile (multiple of `mult`, <= pref when possible) and the padded
    dimension it divides."""
    padded = _round_up(dim, mult)
    if padded <= pref:
        return padded, padded
    return pref, _round_up(dim, pref)


def _pick_token_tile(n, target=512):
    """Token-tile for the attention / proj grids: divides n, lane-dense when
    possible.  Small test shapes fall back to a single full tile."""
    if n <= max(target, 128):
        return n, 1
    t = (target // 128) * 128
    while t >= 128:
        if n % t == 0:
            return t, n // t
        t -= 128
    return n, 1


def _pad2(x, rows, cols):
    r, c = x.shape
    if r == rows and c == cols:
        return x
    return jnp.pad(x, ((0, rows - r), (0, cols - c)))


# --------------------------- matmul (+bias) kernel ---------------------------

def _matmul_bias_kernel(x_ref, w_ref, b_ref, o_ref):
    o_ref[...] = (jnp.dot(x_ref[...], w_ref[...],
                          preferred_element_type=jnp.float32)
                  + b_ref[...]).astype(o_ref.dtype)


def pallas_linear(x, w, b=None, tm=256, tn=256, out_dtype=jnp.float32):
    """y = x @ w + b.  All uses in this model have small K, so K stays whole
    (no scratch accumulator / k-grid overhead).
    TODO(synk): add a K grid axis + f32 accumulator for K >> 2048."""
    M, K = x.shape
    N = w.shape[1]
    if b is None:
        b = jnp.zeros((N,), jnp.float32)
    tm_, Mp = _pick_tile(M, tm, 16)      # 16-row multiples for bf16 sublane packing
    tn_, Np = _pick_tile(N, tn, 128)
    Kp = _round_up(K, 128)
    xp = _pad2(x.astype(jnp.bfloat16), Mp, Kp)
    wp = _pad2(w.astype(jnp.bfloat16), Kp, Np)
    bp = _pad2(b.reshape(1, N).astype(jnp.float32), 1, Np)
    out = pl.pallas_call(
        _matmul_bias_kernel,
        out_shape=jax.ShapeDtypeStruct((Mp, Np), out_dtype),
        grid=(Mp // tm_, Np // tn_),
        in_specs=[pl.BlockSpec((tm_, Kp), lambda i, j: (i, 0)),
                  pl.BlockSpec((Kp, tn_), lambda i, j: (0, j)),
                  pl.BlockSpec((1, tn_), lambda i, j: (0, j))],
        out_specs=pl.BlockSpec((tm_, tn_), lambda i, j: (i, j)),
        compiler_params=pltpu.CompilerParams(
            dimension_semantics=("parallel", "parallel")),
    )(xp, wp, bp)
    return out[:M, :N]


# ----------------------- fused LayerNorm + matmul kernel --------------------

def _ln_matmul_kernel(x_ref, g_ref, bta_ref, w_ref, wb_ref, o_ref, xn_ref, *, eps):
    # LayerNorm is computed once per row tile (at the first column step) into a
    # VMEM scratch and reused across all output-column tiles.
    @pl.when(pl.program_id(1) == 0)
    def _():
        x = x_ref[...].astype(jnp.float32)
        mu = jnp.mean(x, axis=-1, keepdims=True)
        var = jnp.mean((x - mu) ** 2, axis=-1, keepdims=True)
        xn = (x - mu) * lax.rsqrt(var + eps) * g_ref[...] + bta_ref[...]
        xn_ref[...] = xn.astype(xn_ref.dtype)

    o_ref[...] = (jnp.dot(xn_ref[...], w_ref[...],
                          preferred_element_type=jnp.float32)
                  + wb_ref[...]).astype(o_ref.dtype)


def pallas_ln_matmul(x, gamma, beta, w, b, eps=1e-5, tm=256, tn=512,
                     out_dtype=jnp.bfloat16):
    """y = LayerNorm(x) @ w + b with LN fused (stats in f32, x read as bf16)."""
    M, C = x.shape
    N = w.shape[1]
    tm_, Mp = _pick_tile(M, tm, 16)
    tn_, Np = _pick_tile(N, tn, 128)
    xp = _pad2(x.astype(jnp.bfloat16), Mp, C)
    wp = _pad2(w.astype(jnp.bfloat16), C, Np)
    bp = _pad2(b.reshape(1, N).astype(jnp.float32), 1, Np)
    out = pl.pallas_call(
        partial(_ln_matmul_kernel, eps=eps),
        out_shape=jax.ShapeDtypeStruct((Mp, Np), out_dtype),
        grid=(Mp // tm_, Np // tn_),
        in_specs=[pl.BlockSpec((tm_, C), lambda i, j: (i, 0)),
                  pl.BlockSpec((1, C), lambda i, j: (0, 0)),
                  pl.BlockSpec((1, C), lambda i, j: (0, 0)),
                  pl.BlockSpec((C, tn_), lambda i, j: (0, j)),
                  pl.BlockSpec((1, tn_), lambda i, j: (0, j))],
        out_specs=pl.BlockSpec((tm_, tn_), lambda i, j: (i, j)),
        scratch_shapes=[pltpu.VMEM((tm_, C), jnp.bfloat16)],
        compiler_params=pltpu.CompilerParams(
            dimension_semantics=("parallel", "arbitrary")),
    )(xp, gamma.reshape(1, C).astype(jnp.float32),
      beta.reshape(1, C).astype(jnp.float32), wp, bp)
    return out[:M, :N]


# ------------------------------ LayerNorm kernel ----------------------------

def _layernorm_kernel(x_ref, g_ref, b_ref, o_ref, *, eps):
    x = x_ref[...].astype(jnp.float32)
    mu = jnp.mean(x, axis=-1, keepdims=True)
    var = jnp.mean((x - mu) ** 2, axis=-1, keepdims=True)
    o_ref[...] = ((x - mu) * lax.rsqrt(var + eps) * g_ref[...]
                  + b_ref[...]).astype(o_ref.dtype)


def pallas_layernorm(x, gamma, beta, eps=1e-5, tm=256, out_dtype=jnp.bfloat16):
    M, C = x.shape
    tm_, Mp = _pick_tile(M, tm, 16)
    xp = _pad2(x.astype(jnp.float32), Mp, C)
    out = pl.pallas_call(
        partial(_layernorm_kernel, eps=eps),
        out_shape=jax.ShapeDtypeStruct((Mp, C), out_dtype),
        grid=(Mp // tm_,),
        in_specs=[pl.BlockSpec((tm_, C), lambda i: (i, 0)),
                  pl.BlockSpec((1, C), lambda i: (0, 0)),
                  pl.BlockSpec((1, C), lambda i: (0, 0))],
        out_specs=pl.BlockSpec((tm_, C), lambda i: (i, 0)),
        compiler_params=pltpu.CompilerParams(dimension_semantics=("parallel",)),
    )(xp, gamma.reshape(1, C).astype(jnp.float32),
      beta.reshape(1, C).astype(jnp.float32))
    return out[:M]


# --------------------------- SFS2D attention kernel -------------------------
#
# Per grid step (one batch element, one token tile):
#   * local branch: L=9 shifted k/v views are produced in-kernel with static
#     lane slices of a halo'd flat token map (no unfold / no 9x HBM traffic);
#     out-of-image positions are handled by the additive mask (logits) and a
#     0/1 validity multiply (values), matching the reference zero padding.
#   * pooled branch: batched MXU einsums over heads.
#   * joint softmax across local+pool keys, pl.reciprocal(approx=True).
#   * output written channel-major (nH, hd, Nt) with the token axis lane-dense.

def _sfs_attn_kernel(qn_ref, qs_ref, k_ref, v_ref, kp_ref, vpt_ref,
                     bl_ref, valid_ref, pb_ref, tok_ref, lb_ref, o_ref,
                     *, win, width):
    nH, hd, Nt = qs_ref.shape[1], qs_ref.shape[2], qs_ref.shape[3]
    L = win * win
    pad = win // 2
    halo = (k_ref.shape[-1] - Nt) // 2

    qs_b = qs_ref[0]                                   # (nH, hd, Nt) bf16
    qs = qs_b.astype(jnp.float32)
    valid = valid_ref[...].astype(jnp.float32)         # (L, Nt) 1 = in-window
    mask_add = (valid - 1.0) * 1e30                    # 0 / -1e30 additive mask
    bl = bl_ref[...]                                    # (nH, L, 1) f32

    # ---- local logits: loop only over the L window offsets
    logits = []
    for l in range(L):
        di, dj = l // win, l % win
        s = (di - pad) * width + (dj - pad)            # flat token shift
        off = s + halo                                  # static slice start
        ks = k_ref[0, 0, :, :, off:off + Nt].astype(jnp.float32)   # (nH, hd, Nt)
        logits.append(jnp.sum(qs * ks, axis=1) + bl[:, l] + mask_add[l])
    attn_local = jnp.stack(logits, axis=1)              # (nH, L, Nt) f32

    # ---- pooled logits on the MXU
    attn_pool = jnp.einsum("hpd,hdn->hpn", kp_ref[0], qs_b,
                           preferred_element_type=jnp.float32)
    attn_pool = attn_pool + pb_ref[...].astype(jnp.float32)        # (nH, P, Nt)

    # ---- joint softmax over the concatenated local + pooled key axis
    m = jnp.maximum(jnp.max(attn_local, axis=1),
                    jnp.max(attn_pool, axis=1))[:, None, :]
    el = jnp.exp(attn_local - m)
    ep = jnp.exp(attn_pool - m)
    denom = jnp.sum(el, axis=1) + jnp.sum(ep, axis=1)              # (nH, Nt)
    inv = pl.reciprocal(denom, approx=True)[:, None, :]
    attn_local = el * inv
    attn_pool = ep * inv

    # ---- local output: coeff = q_norm @ learnable_tokens + bias + attn_local
    coeff = jnp.einsum("hld,hdn->hln", tok_ref[...], qn_ref[0],
                       preferred_element_type=jnp.float32)
    coeff = coeff + lb_ref[...] + attn_local                       # (nH, L, Nt)

    acc = jnp.zeros((nH, hd, Nt), jnp.float32)
    for l in range(L):
        di, dj = l // win, l % win
        off = (di - pad) * width + (dj - pad) + halo
        vs = v_ref[0, 0, :, :, off:off + Nt].astype(jnp.float32)   # (nH, hd, Nt)
        acc = acc + (coeff[:, l] * valid[l])[:, None, :] * vs

    # ---- pooled output on the MXU
    x_pool = jnp.einsum("hdp,hpn->hdn", vpt_ref[0],
                        attn_pool.astype(jnp.bfloat16),
                        preferred_element_type=jnp.float32)

    o_ref[0] = (acc + x_pool).astype(o_ref.dtype)       # channel-major, N lane-dense


def pallas_sfs_attention(qn_t, qs_t, k_tiles, v_tiles, k_pool_n, v_pool_t,
                         bias_local, valid, pool_bias_t, tokens_t, lbias,
                         *, W, win, Nt):
    B, nH, hd, N = qn_t.shape
    nT = k_tiles.shape[1]
    Kh = k_tiles.shape[-1]                              # Nt + 2*halo
    P = k_pool_n.shape[2]
    L = win * win

    return pl.pallas_call(
        partial(_sfs_attn_kernel, win=win, width=W),
        out_shape=jax.ShapeDtypeStruct((B, nH, hd, N), jnp.bfloat16),
        grid=(B, nT),
        in_specs=[
            pl.BlockSpec((1, nH, hd, Nt), lambda b, t: (b, 0, 0, t)),      # q_norm^T
            pl.BlockSpec((1, nH, hd, Nt), lambda b, t: (b, 0, 0, t)),      # q_scaled^T
            pl.BlockSpec((1, 1, nH, hd, Kh), lambda b, t: (b, t, 0, 0, 0)),  # k halo tile
            pl.BlockSpec((1, 1, nH, hd, Kh), lambda b, t: (b, t, 0, 0, 0)),  # v halo tile
            pl.BlockSpec((1, nH, P, hd), lambda b, t: (b, 0, 0, 0)),       # k_pool (norm)
            pl.BlockSpec((1, nH, hd, P), lambda b, t: (b, 0, 0, 0)),       # v_pool^T
            pl.BlockSpec((nH, L, 1), lambda b, t: (0, 0, 0)),              # local rel bias
            pl.BlockSpec((L, Nt), lambda b, t: (0, t)),                    # validity mask
            pl.BlockSpec((nH, P, Nt), lambda b, t: (0, 0, t)),             # pool cpb bias^T
            pl.BlockSpec((nH, L, hd), lambda b, t: (0, 0, 0)),             # learnable tokens^T
            pl.BlockSpec((nH, L, 1), lambda b, t: (0, 0, 0)),              # learnable bias
        ],
        out_specs=pl.BlockSpec((1, nH, hd, Nt), lambda b, t: (b, 0, 0, t)),
        compiler_params=pltpu.CompilerParams(
            dimension_semantics=("parallel", "parallel"),
            vmem_limit_bytes=64 * 1024 * 1024),
    )(qn_t, qs_t, k_tiles, v_tiles, k_pool_n, v_pool_t,
      bias_local, valid, pool_bias_t, tokens_t, lbias)


# ------------------- output projection + residual kernel --------------------

def _proj_res_kernel(a_ref, w_ref, b_ref, r_ref, o_ref):
    # a is channel-major (C, Nt); fold the transpose into the matmul via
    # lhs-contracting dim 0 ("TN" dimension numbers) -> output is token-major.
    a = a_ref[0]
    y = lax.dot_general(a, w_ref[...], (((0,), (0,)), ((), ())),
                        preferred_element_type=jnp.float32)        # (Nt, Cout)
    y = y + b_ref[...] + r_ref[0].astype(jnp.float32)              # bias + residual
    o_ref[0] = y.astype(o_ref.dtype)


def pallas_proj_residual(attn_cm, w, b, residual, out_dtype=jnp.bfloat16, tn=512):
    B, C, N = attn_cm.shape
    Cout = w.shape[1]
    Nt, nT = _pick_token_tile(N, target=tn)
    return pl.pallas_call(
        _proj_res_kernel,
        out_shape=jax.ShapeDtypeStruct((B, N, Cout), out_dtype),
        grid=(B, nT),
        in_specs=[pl.BlockSpec((1, C, Nt), lambda bb, j: (bb, 0, j)),
                  pl.BlockSpec((C, Cout), lambda bb, j: (0, 0)),
                  pl.BlockSpec((1, Cout), lambda bb, j: (0, 0)),
                  pl.BlockSpec((1, Nt, Cout), lambda bb, j: (bb, j, 0))],
        out_specs=pl.BlockSpec((1, Nt, Cout), lambda bb, j: (bb, j, 0)),
        compiler_params=pltpu.CompilerParams(
            dimension_semantics=("parallel", "parallel")),
    )(attn_cm.astype(jnp.bfloat16), w.astype(jnp.bfloat16),
      b.reshape(1, Cout).astype(jnp.float32),
      residual.astype(jnp.bfloat16))


# ------------------------- static buffers (numpy) --------------------------

def _adaptive_pool1d(v, out_len):
    n = len(v)
    res = np.empty(out_len, np.float32)
    for k in range(out_len):
        s = (k * n) // out_len
        e = -(-((k + 1) * n) // out_len)  # ceil
        res[k] = v[s:e].mean()
    return res


def get_relative_position_cpb(query_size, key_size, pretrain_size=None):
    pretrain_size = pretrain_size or query_size
    axis_qh = np.arange(query_size[0], dtype=np.float32)
    axis_kh = _adaptive_pool1d(axis_qh, key_size[0])
    axis_qw = np.arange(query_size[1], dtype=np.float32)
    axis_kw = _adaptive_pool1d(axis_qw, key_size[1])
    axis_kh, axis_kw = np.meshgrid(axis_kh, axis_kw, indexing="ij")
    axis_qh, axis_qw = np.meshgrid(axis_qh, axis_qw, indexing="ij")
    axis_kh = axis_kh.reshape(-1); axis_kw = axis_kw.reshape(-1)
    axis_qh = axis_qh.reshape(-1); axis_qw = axis_qw.reshape(-1)
    rel_h = (axis_qh[:, None] - axis_kh[None, :]) / (pretrain_size[0] - 1) * 8
    rel_w = (axis_qw[:, None] - axis_kw[None, :]) / (pretrain_size[1] - 1) * 8
    rel_hw = np.stack([rel_h, rel_w], axis=-1).reshape(-1, 2)
    table, idx = np.unique(rel_hw, axis=0, return_inverse=True)
    table = np.sign(table) * np.log2(np.abs(table) + 1.0) / np.log2(8.0)
    return idx.reshape(-1).astype(np.int32), table.astype(np.float32)


def get_seqlen_and_mask(H, W, window_size):
    pad = window_size // 2
    grid = np.zeros((H + 2 * pad, W + 2 * pad), np.float32)
    grid[pad:pad + H, pad:pad + W] = 1.0
    L = window_size * window_size
    mask = np.zeros((H * W, L), bool)
    for n in range(H * W):
        i, j = n // W, n % W
        k = 0
        for di in range(window_size):
            for dj in range(window_size):
                mask[n, k] = grid[i + di, j + dj] == 0
                k += 1
    seqlen = L - mask.sum(-1)
    return seqlen.astype(np.float32), mask


def make_stage_buffers(H, W, window_size=3, sr_ratio=1):
    L = window_size * window_size
    pool_H, pool_W = H // sr_ratio, W // sr_ratio
    P = pool_H * pool_W
    seqlen, mask = get_seqlen_and_mask(H, W, window_size)
    idx, table = get_relative_position_cpb((H, W), (pool_H, pool_W))
    valid = (~mask).astype(np.float32).T                 # (L, N): 1 inside image
    return dict(
        window_size=window_size, local_len=L, pool_len=P,
        seq_length_scale=jnp.asarray(np.log(seqlen + P).reshape(-1, 1), jnp.float32),
        valid=jnp.asarray(valid, jnp.float32),
        rel_pos_index=jnp.asarray(idx),
        coords_table=jnp.asarray(table),
    )


# ------------------------------ JAX glue ops -------------------------------

def l2_normalize(x, axis=-1, eps=1e-12):
    n = jnp.sqrt(jnp.sum(x * x, axis=axis, keepdims=True))
    return x / jnp.maximum(n, eps)


def _halo_token_tiles(x_t, n_tile, halo):
    """(B, nH, hd, N) -> (B, nT, nH, hd, n_tile + 2*halo), zero padded at the
    token-range ends; only the small halo is duplicated per tile."""
    B, nH, hd, N = x_t.shape
    nT = N // n_tile
    xp = jnp.pad(x_t, ((0, 0), (0, 0), (0, 0), (halo, halo)))
    tiles = [xp[:, :, :, t * n_tile: t * n_tile + n_tile + 2 * halo]
             for t in range(nT)]
    return jnp.stack(tiles, axis=1)


def sfs2d_forward(tokens, H, W, bp, buf):
    # tokens: (B, N, C) block input (pre-LN); ln_1 is fused into the 1st kernel
    B, N, C = tokens.shape
    p = bp["attn"]
    nH = p["num_heads"]
    hd = C // nH
    L = buf["local_len"]
    P = buf["pool_len"]
    win = buf["window_size"]
    pad = win // 2
    halo = pad * W + pad

    # fused ln_1 + [q | kv | sr] projection: one kernel, x read from HBM once
    w_fused = jnp.concatenate([p["q_w"], p["kv_w"], p["sr_w"]], axis=1)   # (C, 4C)
    b_fused = jnp.concatenate([p["q_b"], p["kv_b"], p["sr_b"]], axis=0)   # (4C,)
    y = pallas_ln_matmul(tokens.reshape(B * N, C), bp["ln1_g"], bp["ln1_b"],
                         w_fused, b_fused, eps=1e-6, out_dtype=jnp.bfloat16)
    q = y[:, :C]
    kv = y[:, C:3 * C]
    x_sr = y[:, 3 * C:]

    # queries (bf16 into the kernel; f32 only for the normalize / scale glue)
    q = q.reshape(B, N, nH, hd).transpose(0, 2, 1, 3).astype(jnp.float32)  # (B,nH,N,hd)
    q_norm = l2_normalize(q, axis=-1)
    scale = jax.nn.softplus(p["temperature"])                    # (nH,1,1) == 1/0.24
    q_scaled = (q_norm + p["query_embedding"]) * scale * buf["seq_length_scale"]
    qn_t = q_norm.transpose(0, 1, 3, 2).astype(jnp.bfloat16)     # (B,nH,hd,N)
    qs_t = q_scaled.transpose(0, 1, 3, 2).astype(jnp.bfloat16)

    # local keys / values: flat per-head token maps with a halo (no 9x unfold)
    k_loc = l2_normalize(kv[:, :C].astype(jnp.float32).reshape(B, N, nH, hd), axis=-1)
    v_loc = kv[:, C:].reshape(B, N, nH, hd)
    k_t = k_loc.transpose(0, 2, 3, 1).astype(jnp.bfloat16)       # (B,nH,hd,N)
    v_t = v_loc.transpose(0, 2, 3, 1).astype(jnp.bfloat16)
    Nt, _ = _pick_token_tile(N)
    k_tiles = _halo_token_tiles(k_t, Nt, halo)                   # (B,nT,nH,hd,Nt+2h)
    v_tiles = _halo_token_tiles(v_t, Nt, halo)

    # pooled branch: sr (1x1 conv == per-token linear, already in the fused
    # projection) -> exact GELU -> adaptive pool (identity: sr_ratio=1) ->
    # fused LayerNorm + kv projection.
    x_sr_act = jax.nn.gelu(x_sr.astype(jnp.float32), approximate=False)
    kv_p = pallas_ln_matmul(x_sr_act, p["norm_g"], p["norm_b"],
                            p["kv_w"], p["kv_b"], eps=1e-5, out_dtype=jnp.bfloat16)
    kv_p = kv_p.astype(jnp.float32).reshape(B, P, 2 * nH, hd).transpose(0, 2, 1, 3)
    k_pool, v_pool = kv_p[:, :nH], kv_p[:, nH:]
    k_pool_n = l2_normalize(k_pool, axis=-1).astype(jnp.bfloat16)   # (B,nH,P,hd)
    v_pool_t = v_pool.transpose(0, 1, 3, 2).astype(jnp.bfloat16)    # (B,nH,hd,P)

    # continuous position bias for pooled keys.  The K=2 cpb MLP is tiny and a
    # terrible MXU fit, so it stays in plain XLA; the gathered bias is stored
    # bf16 to halve the largest attention DMA.
    # TODO(synk): at production N, gather the bias in-kernel from the small cpb
    # table via PrefetchScalarGridSpec (rel_pos_index as scalar prefetch).
    t = jnp.maximum(buf["coords_table"] @ p["cpb1_w"] + p["cpb1_b"], 0.0)
    t = t @ p["cpb2_w"] + p["cpb2_b"]                               # (T, nH)
    pool_bias = t.T[:, buf["rel_pos_index"]].reshape(nH, N, P)
    pool_bias_t = pool_bias.transpose(0, 2, 1).astype(jnp.bfloat16)  # (nH, P, N)

    attn_out = pallas_sfs_attention(
        qn_t, qs_t, k_tiles, v_tiles, k_pool_n, v_pool_t,
        p["rel_bias_local"].reshape(nH, L, 1).astype(jnp.float32),
        buf["valid"], pool_bias_t,
        p["learnable_tokens"].transpose(0, 2, 1).astype(jnp.bfloat16),
        p["learnable_bias"].reshape(nH, L, 1).astype(jnp.float32),
        W=W, win=win, Nt=Nt)                                        # (B,nH,hd,N) bf16

    # channel-major (B, C, N): free reshape; the transpose to token-major is
    # folded into the projection matmul, which also fuses bias + residual add.
    attn_cm = attn_out.reshape(B, C, N)
    out = pallas_proj_residual(attn_cm, p["proj_w"], p["proj_b"], tokens)
    return out  # (B, N, C); attn_drop / proj_drop / DropPath identity (inference)


def cvss_block_forward(x_nhwc, bp, buf):
    B, H, W, C = x_nhwc.shape
    tokens = x_nhwc.reshape(B, H * W, C)
    # TODO(synk): the reference CVSSBlock calls SFS2D(x) without H, W or the
    # relative-position inputs (it would not run in PyTorch); we supply them
    # from the stage resolution, the only consistent interpretation.
    y = sfs2d_forward(tokens, H, W, bp, buf)   # ln_1 + residual fused in-kernel
    return y.reshape(B, H, W, C)


def patch_merging_forward(x, p):
    B, H, W, C = x.shape
    x0 = x[:, 0::2, 0::2, :]
    x1 = x[:, 1::2, 0::2, :]
    x2 = x[:, 0::2, 1::2, :]
    x3 = x[:, 1::2, 1::2, :]
    xc = jnp.concatenate([x0, x1, x2, x3], axis=-1).reshape(-1, 4 * C)
    out = pallas_ln_matmul(xc, p["norm_g"], p["norm_b"], p["red_w"],
                           jnp.zeros((2 * C,), jnp.float32), eps=1e-5,
                           out_dtype=jnp.bfloat16)
    return out.reshape(B, H // 2, W // 2, 2 * C)


def cvss_layer_forward(x, lp):
    x1 = x
    # Faithful to CVSSLayer.forward: every block consumes the ORIGINAL layer
    # input x (x is never updated inside the block loop in the reference).
    for bp in lp["blocks"]:
        x1 = cvss_block_forward(x, bp, lp["buffers"])
    if lp["downsample"] is not None:
        x_out = patch_merging_forward(x1, lp["downsample"])
    else:
        x_out = x  # reference returns the (unchanged) layer input here
    return x1, x_out


def patch_embed_forward(x_nchw, p, ps):
    B, Cin, Hi, Wi = x_nchw.shape
    Hp, Wp = Hi // ps, Wi // ps
    x = x_nchw.reshape(B, Cin, Hp, ps, Wp, ps).transpose(0, 2, 4, 1, 3, 5)
    x = x.reshape(B * Hp * Wp, Cin * ps * ps)          # patch vector order (c, kh, kw)
    y = pallas_linear(x, p["proj_w"], p["proj_b"], out_dtype=jnp.float32)
    D = y.shape[-1]
    y = pallas_layernorm(y, p["norm_g"], p["norm_b"], out_dtype=jnp.bfloat16)
    return y.reshape(B, Hp, Wp, D)


def vssm_forward(x_nchw, params):
    x = patch_embed_forward(x_nchw, params["patch_embed"], params["patch_size"])
    skip_list = []
    for lp in params["layers"]:
        x1, x = cvss_layer_forward(x, lp)
        skip_list.append(x1)
    return x, skip_list


# --------------------------- parameter creation ----------------------------

def tn(key, shape, std=0.02):
    return (std * jax.random.truncated_normal(key, -2.0, 2.0, shape)).astype(jnp.float32)


def init_sfs2d(key, dim, num_heads=8, window_size=3):
    hd = dim // num_heads
    L = window_size * window_size
    k = jax.random.split(key, 9)
    return dict(
        num_heads=num_heads,
        temperature=jnp.full((num_heads, 1, 1),
                             float(np.log(np.exp(1.0 / 0.24) - 1.0)), jnp.float32),
        q_w=tn(k[0], (dim, dim)), q_b=jnp.zeros((dim,), jnp.float32),
        query_embedding=tn(k[1], (num_heads, 1, hd)),
        kv_w=tn(k[2], (dim, 2 * dim)), kv_b=jnp.zeros((2 * dim,), jnp.float32),
        proj_w=tn(k[3], (dim, dim)), proj_b=jnp.zeros((dim,), jnp.float32),
        sr_w=tn(k[4], (dim, dim)), sr_b=jnp.zeros((dim,), jnp.float32),
        norm_g=jnp.ones((dim,), jnp.float32), norm_b=jnp.zeros((dim,), jnp.float32),
        cpb1_w=tn(k[5], (2, 512)), cpb1_b=jnp.zeros((512,), jnp.float32),
        cpb2_w=tn(k[6], (512, num_heads)), cpb2_b=jnp.zeros((num_heads,), jnp.float32),
        rel_bias_local=tn(k[7], (num_heads, L), std=4e-4),
        learnable_tokens=tn(k[8], (num_heads, hd, L)),
        learnable_bias=jnp.zeros((num_heads, 1, L), jnp.float32),
    )


def init_vssm(key, patch_size=4, in_chans=3, depths=(1, 1), dims=(32, 64),
              img_size=16, num_heads=8, window_size=3):
    keys = jax.random.split(key, 2 + sum(depths) + len(depths))
    ki = iter(keys)
    params = dict(patch_size=patch_size)
    params["patch_embed"] = dict(
        proj_w=tn(next(ki), (in_chans * patch_size * patch_size, dims[0])),
        proj_b=jnp.zeros((dims[0],), jnp.float32),
        norm_g=jnp.ones((dims[0],), jnp.float32),
        norm_b=jnp.zeros((dims[0],), jnp.float32),
    )
    layers = []
    for i, (depth, dim) in enumerate(zip(depths, dims)):
        res = img_size // (2 ** (i + 2))
        blocks = []
        for _ in range(depth):
            bk = next(ki)
            blocks.append(dict(
                ln1_g=jnp.ones((dim,), jnp.float32),
                ln1_b=jnp.zeros((dim,), jnp.float32),
                attn=init_sfs2d(bk, dim, num_heads, window_size),
            ))
        if i < len(depths) - 1:
            dk = next(ki)
            downsample = dict(
                norm_g=jnp.ones((4 * dim,), jnp.float32),
                norm_b=jnp.zeros((4 * dim,), jnp.float32),
                red_w=tn(dk, (4 * dim, 2 * dim)),
            )
        else:
            downsample = None
        layers.append(dict(blocks=blocks,
                           buffers=make_stage_buffers(res, res, window_size),
                           downsample=downsample))
    params["layers"] = layers
    return params


# ---------------------------------- main -----------------------------------

if __name__ == "__main__":
    key = jax.random.PRNGKey(0)
    xkey, pkey = jax.random.split(key)
    B, Cin, IMG = 2, 3, 16
    x = jax.random.normal(xkey, (B, Cin, IMG, IMG), jnp.float32)

    params = init_vssm(pkey, patch_size=4, in_chans=Cin, depths=(1, 1),
                       dims=(32, 64), img_size=IMG, num_heads=8, window_size=3)

    out, skips = vssm_forward(x, params)
    out = jax.block_until_ready(out)
    skips = [jax.block_until_ready(s) for s in skips]

    assert out.shape == (B, IMG // 8, IMG // 8, 64), out.shape
    assert skips[0].shape == (B, IMG // 4, IMG // 4, 32), skips[0].shape
    assert skips[1].shape == (B, IMG // 8, IMG // 8, 64), skips[1].shape
    assert bool(jnp.all(jnp.isfinite(out.astype(jnp.float32))))
    assert all(bool(jnp.all(jnp.isfinite(s.astype(jnp.float32)))) for s in skips)
    print("KERNEL_OK")
</pallas_src>

<mosaic_0001>
module attributes {stable_mosaic.version = 11 : i64} {
  func.func @_matmul_bias_kernel(%arg0: i32, %arg1: i32, %arg2: memref<32x128xbf16, #tpu.memory_space<vmem>>, %arg3: memref<128x128xbf16, #tpu.memory_space<vmem>>, %arg4: memref<1x128xf32, #tpu.memory_space<vmem>>, %arg5: memref<32x128xf32, #tpu.memory_space<vmem>>) attributes {dimension_semantics = [#tpu.dimension_semantics<parallel>, #tpu.dimension_semantics<parallel>], iteration_bounds = array<i64: 1, 1>, scalar_prefetch = 0 : i64, scratch_operands = 0 : i64, tpu.core_type = #tpu.core_type<tc>, window_params = [{transform_indices = @transform_0, window_bounds = array<i64: 32, 128>}, {transform_indices = @transform_1, window_bounds = array<i64: 128, 128>}, {transform_indices = @transform_2, window_bounds = array<i64: 1, 128>}, {transform_indices = @transform_3, window_bounds = array<i64: 32, 128>}]} {
    %c0 = arith.constant 0 : index
    %c0_0 = arith.constant 0 : index
    %0 = vector.load %arg2[%c0, %c0_0] : memref<32x128xbf16, #tpu.memory_space<vmem>>, vector<32x128xbf16>
    %c0_1 = arith.constant 0 : index
    %c0_2 = arith.constant 0 : index
    %1 = vector.load %arg3[%c0_1, %c0_2] : memref<128x128xbf16, #tpu.memory_space<vmem>>, vector<128x128xbf16>
    %cst = arith.constant dense<0.000000e+00> : vector<32x128xf32>
    %2 = tpu.matmul %0, %1, %cst {dimension_numbers = #tpu.dot_dimension_numbers<[1], [0], [0], [1], [0, 0, 1, 1], [], []>} : vector<32x128xbf16>, vector<128x128xbf16>, vector<32x128xf32> -> vector<32x128xf32>
    %c0_3 = arith.constant 0 : index
    %c0_4 = arith.constant 0 : index
    %3 = vector.load %arg4[%c0_3, %c0_4] : memref<1x128xf32, #tpu.memory_space<vmem>>, vector<1x128xf32>
    %4 = vector.broadcast %3 : vector<1x128xf32> to vector<32x128xf32>
    %5 = arith.addf %2, %4 : vector<32x128xf32>
    %c0_5 = arith.constant 0 : index
    %c0_6 = arith.constant 0 : index
    %6 = vector.load %arg5[%c0_5, %c0_6] : memref<32x128xf32, #tpu.memory_space<vmem>>, vector<32x128xf32>
    tpu.vector_store %arg5[%c0_5, %c0_6], %5 {strides = array<i32>} : memref<32x128xf32, #tpu.memory_space<vmem>>, vector<32x128xf32>,
    return
  }
  func.func @transform_0(%arg0: i32, %arg1: i32) -> (i32, i32) {
    %c0_i32 = arith.constant 0 : i32
    %c0_i32_0 = arith.constant 0 : i32
    return %arg0, %c0_i32 : i32, i32
  }
  func.func @transform_1(%arg0: i32, %arg1: i32) -> (i32, i32) {
    %c0_i32 = arith.constant 0 : i32
    %c0_i32_0 = arith.constant 0 : i32
    return %c0_i32, %arg1 : i32, i32
  }
  func.func @transform_2(%arg0: i32, %arg1: i32) -> (i32, i32) {
    %c0_i32 = arith.constant 0 : i32
    %c0_i32_0 = arith.constant 0 : i32
    return %c0_i32, %arg1 : i32, i32
  }
  func.func @transform_3(%arg0: i32, %arg1: i32) -> (i32, i32) {
    %c0_i32 = arith.constant 0 : i32
    return %arg0, %arg1 : i32, i32
  }
}

</mosaic_0001>

<bundles_post_ra>
// kernel: tpu_custom_call.1
= control target key start
LH: loop header
LB: loop body
LE: loop exit
PB: predicated region body
PF: predicated region fallthrough
CT: control target
= control target key end

     0   :  { %8 = vsyncpa [#allocation3], 0  ;;  %s357_s0 = inlined_call_operand.hbm [shape: bf16[32,128], index: 0, kind: input, shape index: {}]   ;;  %s358_s1 = inlined_call_operand.hbm [shape: bf16[128,128], index: 1, kind: input, shape index: {}]   ;;  %s359_s2 = inlined_call_operand.vmem [shape: f32[1,128], index: 2, kind: input, shape index: {}]   ;;  %s360_s3 = inlined_call_operand.hbm [shape: f32[32,128], index: 3, kind: output, shape index: {}]  }
   0x1   :  { %9 = vsyncpa [#allocation6], 0 }
   0x2   :  { %10 = vsyncpa [#allocation4], 0  ;;  %s15_s14 = sshll.u32 %s357_s0, 4  ;;  %s318_s15 = smov [#allocation2]   ;;  %s16_s14 = int_to_ptr.hbm [resolvable:$true] %s15_s14 }
   0x3   :  { %s17_s16 = sshll.u32 %s318_s15, 4  ;;  %s28_s19 = sshll.u32 %s358_s1, 4  ;;  %s18_s16 = int_to_ptr.vmem [resolvable:$true] %s17_s16  ;;  %s29_s19 = int_to_ptr.hbm [resolvable:$true] %s28_s19 }
   0x4   :  { %s319_s20 = smov 64   ;;  %s320_s21 = smov 4  }
   0x5   :  { %23 = dma.hbm_to_vmem [thread:$0]  %s16_s14, 256, %s18_s16, [#allocation3], %s319_s20, %s319_s20, %s320_s21  }
   0x6   :  { %s321_s22 = smov [#allocation5]  }
   0x7   :  { %s30_s23 = sshll.u32 %s321_s22, 4  ;;  %s31_s23 = int_to_ptr.vmem [resolvable:$true] %s30_s23 }
   0x8   :  { %36 = dma.hbm_to_vmem [thread:$0]  %s29_s19, 1024, %s31_s23, [#allocation6], %s319_s20, %s319_s20, %s320_s21  }
   0x9   :  { %312 = dma.done.wait [#allocation3], 256  }
   0xa   :  { %313 = vsyncadd [#allocation3], 4294967040 }
   0xb   :  { %314 = dma.done.wait [#allocation6], 1024  }
   0xc   :  { %315 = vsyncadd [#allocation6], 4294966272  ;;  %v223_v0 = vld [vmem:[#allocation5 + $0x38] sm:$0xff]  ;;  %v222_v1 = vld [vmem:[#allocation5 + $0x30] sm:$0xff]  ;;  %s322_s24 = smov [#allocation7]   ;;  %s160_s28 = sshll.u32 %s360_s3, 4  ;;  %s161_s28 = int_to_ptr.hbm [resolvable:$true] %s160_s28 }
   0xd   :  { %131 = vmatpush.bf16.msra.mxu0 %v223_v0  ;;  %224 = vmatpush.bf16.msra.mxu1 %v223_v0  ;;  %v221_v2 = vld [vmem:[#allocation5 + $0x28] sm:$0xff]  ;;  %v220_v3 = vld [vmem:[#allocation5 + $0x20] sm:$0xff]  ;;  %v219_v4 = vld [vmem:[#allocation5 + $0x18] sm:$0xff]  ;;  %s158_s25 = sshll.u32 %s322_s24, 4  ;;  %s324_s29 = smov 8   ;;  %s159_s25 = int_to_ptr.vmem [resolvable:$true] %s158_s25 }
   0xe   :  { %v218_v5 = vld [vmem:[#allocation5 + $0x10] sm:$0xff]  ;;  %v217_v6 = vld [vmem:[#allocation5 + $0x8] sm:$0xff]  ;;  %v216_v7 = vld [vmem:[#allocation5] sm:$0xff] }
   0xf   :  { %v214_v8 = vld [vmem:[#allocation2] sm:$0xff]  ;;  %v215_v9 = vld [vmem:[#allocation2 + $0x8] sm:$0xff] }
  0x10   :  { %v239_v10 = vld [vmem:[%s359_s2] ss:$0 sm:$0xff]  ;;  %s323_s2 = smov 128  }
  0x11   :  { %132 = vmatpush.bf16.msra.mxu0 %v222_v1  ;;  %225 = vmatpush.bf16.msra.mxu1 %v222_v1 }
  0x15   :  { %133 = vmatpush.bf16.msra.mxu0 %v221_v2  ;;  %226 = vmatpush.bf16.msra.mxu1 %v221_v2 }
  0x19   :  { %134 = vmatpush.bf16.msra.mxu0 %v220_v3  ;;  %227 = vmatpush.bf16.msra.mxu1 %v220_v3 }
  0x1d   :  { %135 = vmatpush.bf16.msra.mxu0 %v219_v4  ;;  %228 = vmatpush.bf16.msra.mxu1 %v219_v4 }
  0x21   :  { %136 = vmatpush.bf16.msra.mxu0 %v218_v5  ;;  %229 = vmatpush.bf16.msra.mxu1 %v218_v5 }
  0x25   :  { %137 = vmatpush.bf16.msra.mxu0 %v217_v6  ;;  %230 = vmatpush.bf16.msra.mxu1 %v217_v6 }
  0x29   :  { %138 = vmatpush.bf16.msra.mxu0 %v216_v7  ;;  %231 = vmatpush.bf16.msra.mxu1 %v216_v7 }
  0x2c   :  { %139 = vmatmul.bf16.vlgmr.msra.gmra.mxu0 %v214_v8  ;;  %144 = vmatmul.bf16.vlgmr.msra.gmra.mxu1 %v215_v9 }
  0xa9   :  { %v140_v11 = vpop.f32.mrf.mxu0  ;;  %v145_v12 = vpop.f32.mrf.mxu1 }
  0xaa   :  { %v141_v13 = vadd.f32 %v239_v10, %v140_v11  ;;  %v146_v14 = vadd.f32 %v239_v10, %v145_v12 }
  0xac   :  { %150 = vst [vmem:[#allocation7] sm:$0xff] %v141_v13 }
  0xad   :  { %152 = vst [vmem:[#allocation7 + $0x10] sm:$0xff] %v146_v14 }
  0xb1   :  { %v142_v15 = vpop.f32.mrf.mxu0  ;;  %v147_v16 = vpop.f32.mrf.mxu1 }
  0xb2   :  { %v143_v17 = vadd.f32 %v239_v10, %v142_v15  ;;  %v148_v18 = vadd.f32 %v239_v10, %v147_v16 }
  0xb4   :  { %151 = vst [vmem:[#allocation7 + $0x8] sm:$0xff] %v143_v17 }
  0xb5   :  { %153 = vst [vmem:[#allocation7 + $0x18] sm:$0xff] %v148_v18 }
  0xb6   :  { %166 = dma.vmem_to_hbm [thread:$0]  %s159_s25, 512, %s161_s28, [#allocation4], %s323_s2, %s323_s2, %s324_s29  }
  0xb7   :  { %316 = dma.done.wait [#allocation4], 512  }
  0xb8   :  { %317 = vsyncadd [#allocation4], 4294966784 }
  0xb9   :  { %171 = vsyncpa [#allocation3], 1 }
  0xba   :  { %172 = vsyncpa [#allocation6], 1 }
  0xbb   :  { %173 = vsyncpa [#allocation4], 1 }

</bundles_post_ra>
